<compile_context>
chip_gen: v7x
topology: tpu7x:2x2x1
jax: 0.10.0
libtpu: 0.0.40
codegen_flags: <defaults>
</compile_context>

<pallas_src>
import math

import jax
import jax.numpy as jnp
from jax import lax
from jax.experimental import pallas as pl
from jax.experimental.pallas import tpu as pltpu

LEAKY_SLOPE = 0.2
BN_EPS = 0.8              # PyTorch BatchNorm2d(out, 0.8): positional eps (intentional)
SUBLANE = 16              # bf16 sublane packing
TM_MAX = 1024             # cap on rows per tile (keeps double-buffered VMEM tiny)
VMEM_LIMIT = 32 * 1024 * 1024   # explicit; safe on v5e/v6e (128 MiB) and v7x (64 MiB)


def _round_up(x, m):
    return ((x + m - 1) // m) * m


def _cdiv(a, b):
    return -(-a // b)


def _choose_tiles(m):
    """Row tile TM (multiple of 16) + padded row count Mp.

    Balanced tiles; >=2 grid steps whenever m > 16 so both v7x TensorCores are used
    (harmless on single-TC v5e/v6e)."""
    if m <= SUBLANE:
        return SUBLANE, SUBLANE
    n_tiles = max(2, _cdiv(m, TM_MAX))
    tm = _round_up(_cdiv(m, n_tiles), SUBLANE)
    mp = _round_up(m, tm)
    return tm, mp


# ---------------------------------------------------------------------------
# Kernels
# ---------------------------------------------------------------------------
def _conv_block_kernel(p_ref, w_ref, bss_ref, o_ref):
    # (TM, K) @ (K, Cout) on the MXU: bf16 inputs, f32 accumulation.
    acc = jnp.dot(p_ref[...], w_ref[...], preferred_element_type=jnp.float32)
    acc = acc + bss_ref[0:1, :]                       # conv bias (before LReLU)
    acc = jnp.maximum(acc, LEAKY_SLOPE * acc)         # LeakyReLU(0.2)
    # Dropout2d(0.25) -> identity in eval mode.
    # BatchNorm2d folded to per-channel scale/shift (identity when bn=False).
    o_ref[...] = (acc * bss_ref[1:2, :] + bss_ref[2:3, :]).astype(o_ref.dtype)


def _sigmoid_softmax_tail(z):
    # column 0: Linear -> Sigmoid ; columns 1..NC: Linear -> Softmax (exact norm).
    col = lax.broadcasted_iota(jnp.int32, z.shape, dimension=1)
    sig = 1.0 / (1.0 + jnp.exp(-z))
    logits = jnp.where(col >= 1, z, jnp.float32(-1e30))
    m = jnp.max(logits, axis=-1, keepdims=True)
    e = jnp.exp(logits - m)                           # col 0 -> exp(-huge) = 0
    denom = jnp.sum(e, axis=-1, keepdims=True)
    probs = e / denom                                 # exact: rows sum to 1
    return jnp.where(col == 0, sig, probs)


def _block_heads_kernel(p_ref, wc_ref, bss_ref, wh_ref, bh_ref, o_ref):
    # Fused: last conv block + adversarial head + classification head.
    h = jnp.dot(p_ref[...], wc_ref[...], preferred_element_type=jnp.float32)
    h = h + bss_ref[0:1, :]
    h = jnp.maximum(h, LEAKY_SLOPE * h)
    h = h * bss_ref[1:2, :] + bss_ref[2:3, :]         # features stay in VMEM/vregs
    z = jnp.dot(h.astype(jnp.bfloat16), wh_ref[...],
                preferred_element_type=jnp.float32) + bh_ref[...]
    o_ref[...] = _sigmoid_softmax_tail(z)


def _heads_kernel(f_ref, w_ref, b_ref, o_ref):
    z = jnp.dot(f_ref[...], w_ref[...], preferred_element_type=jnp.float32) + b_ref[...]
    o_ref[...] = _sigmoid_softmax_tail(z)


# ---------------------------------------------------------------------------
# Wrappers
# ---------------------------------------------------------------------------
def _im2col_s2(x):
    """x: (N,H,W,C) NHWC (bf16) -> patches (N*Ho*Wo, 9*C) in (kh,kw,cin) column order."""
    n, h, w, c = x.shape
    ho = (h - 1) // 2 + 1
    wo = (w - 1) // 2 + 1
    xp = jnp.pad(x, ((0, 0), (1, 1), (1, 1), (0, 0)))
    cols = [xp[:, kh:kh + 2 * ho:2, kw:kw + 2 * wo:2, :]
            for kh in range(3) for kw in range(3)]
    patches = jnp.concatenate(cols, axis=-1).reshape(n * ho * wo, 9 * c)
    return patches, (n, ho, wo)


def conv_block(x, w2, bss):
    """One discriminator block. x: (N,H,W,Cin) bf16 NHWC -> (N,Ho,Wo,Cout) bf16 NHWC."""
    patches, (n, ho, wo) = _im2col_s2(x)
    m, k = patches.shape
    cout = w2.shape[1]
    tm, mp = _choose_tiles(m)
    if mp != m:
        patches = jnp.pad(patches, ((0, mp - m), (0, 0)))

    out = pl.pallas_call(
        _conv_block_kernel,
        out_shape=jax.ShapeDtypeStruct((mp, cout), jnp.bfloat16),
        grid=(mp // tm,),
        in_specs=[
            pl.BlockSpec((tm, k), lambda i: (i, 0)),       # full-extent K (no padding)
            pl.BlockSpec((k, cout), lambda i: (0, 0)),
            pl.BlockSpec((3, cout), lambda i: (0, 0)),     # packed bias/scale/shift
        ],
        out_specs=pl.BlockSpec((tm, cout), lambda i: (i, 0)),
        compiler_params=pltpu.CompilerParams(
            dimension_semantics=("parallel",),
            vmem_limit_bytes=VMEM_LIMIT),
    )(patches, w2, bss)

    if mp != m:
        out = out[:m]
    return out.reshape(n, ho, wo, cout)


def fused_block_heads(x, w2, bss, head_w, head_b):
    """Last conv block (final spatial 1x1) fused with both heads."""
    patches, (n, ho, wo) = _im2col_s2(x)          # ho == wo == 1 -> rows == batch
    m, k = patches.shape
    cout = w2.shape[1]
    width = head_w.shape[1]                       # 1 + num_classes
    tm, mp = _choose_tiles(m)
    if mp != m:
        patches = jnp.pad(patches, ((0, mp - m), (0, 0)))

    out = pl.pallas_call(
        _block_heads_kernel,
        out_shape=jax.ShapeDtypeStruct((mp, width), jnp.float32),
        grid=(mp // tm,),
        in_specs=[
            pl.BlockSpec((tm, k), lambda i: (i, 0)),
            pl.BlockSpec((k, cout), lambda i: (0, 0)),
            pl.BlockSpec((3, cout), lambda i: (0, 0)),
            pl.BlockSpec((cout, width), lambda i: (0, 0)),
            pl.BlockSpec((1, width), lambda i: (0, 0)),
        ],
        out_specs=pl.BlockSpec((tm, width), lambda i: (i, 0)),
        compiler_params=pltpu.CompilerParams(
            dimension_semantics=("parallel",),
            vmem_limit_bytes=VMEM_LIMIT),
    )(patches, w2, bss, head_w, head_b)

    return out[:n, 0:1], out[:n, 1:]


def heads(feat, head_w, head_b):
    """Separate heads path (used when the final spatial size is > 1x1)."""
    n, f = feat.shape
    width = head_w.shape[1]
    tm, np_ = _choose_tiles(n)
    if np_ != n:
        feat = jnp.pad(feat, ((0, np_ - n), (0, 0)))

    out = pl.pallas_call(
        _heads_kernel,
        out_shape=jax.ShapeDtypeStruct((np_, width), jnp.float32),
        grid=(np_ // tm,),
        in_specs=[
            pl.BlockSpec((tm, f), lambda i: (i, 0)),
            pl.BlockSpec((f, width), lambda i: (0, 0)),
            pl.BlockSpec((1, width), lambda i: (0, 0)),
        ],
        out_specs=pl.BlockSpec((tm, width), lambda i: (i, 0)),
        compiler_params=pltpu.CompilerParams(
            dimension_semantics=("parallel",),
            vmem_limit_bytes=VMEM_LIMIT),
    )(feat, head_w, head_b)

    return out[:n, 0:1], out[:n, 1:]


def _to_hwc_order(w_lin, c, h, w):
    """Permute a PyTorch Linear weight's input dim from (C,H,W) to (H,W,C) order."""
    out = w_lin.shape[0]
    return w_lin.reshape(out, c, h, w).transpose(0, 2, 3, 1).reshape(out, c * h * w)


# ---------------------------------------------------------------------------
# Parameter construction (all kernel-side prep hoisted to init)
# ---------------------------------------------------------------------------
def init_params(key, channels, img_size, num_classes):
    specs = [(channels, 16, False), (16, 32, True), (32, 64, True), (64, 128, True)]
    blocks = []
    for (cin, cout, bn) in specs:
        key, kw, kb, kg, kbe, km, kv = jax.random.split(key, 7)
        bound = 1.0 / math.sqrt(cin * 9)
        w = jax.random.uniform(kw, (cout, cin, 3, 3), jnp.float32, -bound, bound)
        b = jax.random.uniform(kb, (cout,), jnp.float32, -bound, bound)
        if bn:
            gamma = jax.random.uniform(kg, (cout,), jnp.float32, 0.5, 1.5)
            beta = jax.random.uniform(kbe, (cout,), jnp.float32, -0.1, 0.1)
            rmean = jax.random.uniform(km, (cout,), jnp.float32, -0.1, 0.1)
            rvar = jax.random.uniform(kv, (cout,), jnp.float32, 0.5, 1.5)
            scale = gamma / jnp.sqrt(rvar + BN_EPS)
            shift = beta - rmean * scale
        else:
            scale = jnp.ones((cout,), jnp.float32)
            shift = jnp.zeros((cout,), jnp.float32)
        # Hoisted prep: (kh,kw,cin)-ordered (K,Cout) bf16 weight, packed (3,Cout) consts.
        w2 = w.transpose(2, 3, 1, 0).reshape(9 * cin, cout).astype(jnp.bfloat16)
        bss = jnp.stack([b, scale, shift], axis=0)           # (3, Cout) f32
        blocks.append((w2, bss))

    ds = int(math.ceil(img_size / 2 ** 4))
    feat_dim = 128 * ds * ds
    key, k1, k2, k3, k4 = jax.random.split(key, 5)
    bound = 1.0 / math.sqrt(feat_dim)
    adv_w = jax.random.uniform(k1, (1, feat_dim), jnp.float32, -bound, bound)
    adv_b = jax.random.uniform(k2, (1,), jnp.float32, -bound, bound)
    cls_w = jax.random.uniform(k3, (num_classes, feat_dim), jnp.float32, -bound, bound)
    cls_b = jax.random.uniform(k4, (num_classes,), jnp.float32, -bound, bound)

    # Hoisted prep: permute (C,H,W) feature order -> NHWC (H,W,C); fuse both heads.
    w_all = jnp.concatenate([_to_hwc_order(adv_w, 128, ds, ds),
                             _to_hwc_order(cls_w, 128, ds, ds)], axis=0).T
    b_all = jnp.concatenate([adv_b, cls_b]).reshape(1, 1 + num_classes)
    return {
        "blocks": blocks,
        "head_w": w_all.astype(jnp.bfloat16),      # (feat_dim, 1+NC)
        "head_b": b_all,                           # (1, 1+NC) f32
    }


@jax.jit
def discriminator_forward(params, img):
    # img: NCHW (PyTorch) -> NHWC once, bf16 once; stay NHWC/bf16 end-to-end.
    x = img.transpose(0, 2, 3, 1).astype(jnp.bfloat16)
    blocks = params["blocks"]
    for (w2, bss) in blocks[:-1]:
        x = conv_block(x, w2, bss)

    # Fuse the last block with the heads when its output spatial size is 1x1
    # (static shape decision, exercised by the demo config img_size=16).
    _, h, w, _ = x.shape
    ho = (h - 1) // 2 + 1
    wo = (w - 1) // 2 + 1
    w2, bss = blocks[-1]
    if ho == 1 and wo == 1:
        return fused_block_heads(x, w2, bss, params["head_w"], params["head_b"])

    x = conv_block(x, w2, bss)
    n = x.shape[0]
    feat = x.reshape(n, -1)                        # (H,W,C)-ordered features (bf16)
    return heads(feat, params["head_w"], params["head_b"])


# ---------------------------------------------------------------------------
if __name__ == "__main__":
    # small, forward-consistent shapes: channels=1 (MNIST), img_size=16, 10 classes
    BATCH, CHANNELS, IMG_SIZE, NUM_CLASSES = 2, 1, 16, 10

    key = jax.random.PRNGKey(0)
    key, pkey, xkey = jax.random.split(key, 3)
    params = init_params(pkey, CHANNELS, IMG_SIZE, NUM_CLASSES)
    x = jax.random.normal(xkey, (BATCH, CHANNELS, IMG_SIZE, IMG_SIZE), jnp.float32)

    validity, classification = discriminator_forward(params, x)
    validity = jax.block_until_ready(validity)
    classification = jax.block_until_ready(classification)

    assert validity.shape == (BATCH, 1)
    assert classification.shape == (BATCH, NUM_CLASSES)
    # sigmoid output in (0,1); softmax rows sum to 1 (exact normalization in-kernel)
    assert bool(jnp.all((validity > 0) & (validity < 1)))
    assert bool(jnp.allclose(jnp.sum(classification, axis=1), 1.0, atol=1e-3))

    print("KERNEL_OK")
</pallas_src>

<mosaic_0001>
module attributes {stable_mosaic.version = 11 : i64} {
  func.func @_conv_block_kernel(%arg0: i32, %arg1: memref<64x9xbf16, #tpu.memory_space<vmem>>, %arg2: memref<9x16xbf16, #tpu.memory_space<vmem>>, %arg3: memref<3x16xf32, #tpu.memory_space<vmem>>, %arg4: memref<64x16xbf16, #tpu.memory_space<vmem>>) attributes {dimension_semantics = [#tpu.dimension_semantics<parallel>], iteration_bounds = array<i64: 2>, scalar_prefetch = 0 : i64, scratch_operands = 0 : i64, tpu.core_type = #tpu.core_type<tc>, window_params = [{transform_indices = @transform_0, window_bounds = array<i64: 64, 9>}, {pipeline_mode = #tpu.pipeline_mode<synchronous>, transform_indices = @transform_1, window_bounds = array<i64: 9, 16>}, {pipeline_mode = #tpu.pipeline_mode<synchronous>, transform_indices = @transform_2, window_bounds = array<i64: 3, 16>}, {transform_indices = @transform_3, window_bounds = array<i64: 64, 16>}]} {
    %c0 = arith.constant 0 : index
    %c0_0 = arith.constant 0 : index
    %0 = vector.load %arg1[%c0, %c0_0] : memref<64x9xbf16, #tpu.memory_space<vmem>>, vector<64x9xbf16>
    %c0_1 = arith.constant 0 : index
    %c0_2 = arith.constant 0 : index
    %1 = vector.load %arg2[%c0_1, %c0_2] : memref<9x16xbf16, #tpu.memory_space<vmem>>, vector<9x16xbf16>
    %cst = arith.constant dense<0.000000e+00> : vector<64x16xf32>
    %2 = tpu.matmul %0, %1, %cst {dimension_numbers = #tpu.dot_dimension_numbers<[1], [0], [0], [1], [0, 0, 1, 1], [], []>} : vector<64x9xbf16>, vector<9x16xbf16>, vector<64x16xf32> -> vector<64x16xf32>
    %c0_3 = arith.constant 0 : index
    %c0_4 = arith.constant 0 : index
    %3 = vector.load %arg3[%c0_3, %c0_4] : memref<3x16xf32, #tpu.memory_space<vmem>>, vector<1x16xf32>
    %4 = vector.broadcast %3 : vector<1x16xf32> to vector<64x16xf32>
    %5 = arith.addf %2, %4 : vector<64x16xf32>
    %cst_5 = arith.constant 2.000000e-01 : f32
    %6 = vector.broadcast %cst_5 : f32 to vector<64x16xf32>
    %7 = arith.mulf %6, %5 : vector<64x16xf32>
    %8 = arith.maximumf %5, %7 : vector<64x16xf32>
    %c1 = arith.constant 1 : index
    %c0_6 = arith.constant 0 : index
    %9 = vector.load %arg3[%c1, %c0_6] : memref<3x16xf32, #tpu.memory_space<vmem>>, vector<1x16xf32>
    %10 = vector.broadcast %9 : vector<1x16xf32> to vector<64x16xf32>
    %11 = arith.mulf %8, %10 : vector<64x16xf32>
    %c2 = arith.constant 2 : index
    %c0_7 = arith.constant 0 : index
    %12 = vector.load %arg3[%c2, %c0_7] : memref<3x16xf32, #tpu.memory_space<vmem>>, vector<1x16xf32>
    %13 = vector.broadcast %12 : vector<1x16xf32> to vector<64x16xf32>
    %14 = arith.addf %11, %13 : vector<64x16xf32>
    %15 = arith.truncf %14 : vector<64x16xf32> to vector<64x16xbf16>
    %c0_8 = arith.constant 0 : index
    %c0_9 = arith.constant 0 : index
    %16 = vector.load %arg4[%c0_8, %c0_9] : memref<64x16xbf16, #tpu.memory_space<vmem>>, vector<64x16xbf16>
    tpu.vector_store %arg4[%c0_8, %c0_9], %15 {strides = array<i32>} : memref<64x16xbf16, #tpu.memory_space<vmem>>, vector<64x16xbf16>,
    return
  }
  func.func @transform_0(%arg0: i32) -> (i32, i32) {
    %c0_i32 = arith.constant 0 : i32
    %c0_i32_0 = arith.constant 0 : i32
    return %arg0, %c0_i32 : i32, i32
  }
  func.func @transform_1(%arg0: i32) -> (i32, i32) {
    %c0_i32 = arith.constant 0 : i32
    %c0_i32_0 = arith.constant 0 : i32
    %c0_i32_1 = arith.constant 0 : i32
    return %c0_i32, %c0_i32_0 : i32, i32
  }
  func.func @transform_2(%arg0: i32) -> (i32, i32) {
    %c0_i32 = arith.constant 0 : i32
    %c0_i32_0 = arith.constant 0 : i32
    %c0_i32_1 = arith.constant 0 : i32
    return %c0_i32, %c0_i32_0 : i32, i32
  }
  func.func @transform_3(%arg0: i32) -> (i32, i32) {
    %c0_i32 = arith.constant 0 : i32
    %c0_i32_0 = arith.constant 0 : i32
    return %arg0, %c0_i32 : i32, i32
  }
}

module attributes {stable_mosaic.version = 11 : i64} {
  func.func @_conv_block_kernel(%arg0: i32, %arg1: memref<16x144xbf16, #tpu.memory_space<vmem>>, %arg2: memref<144x32xbf16, #tpu.memory_space<vmem>>, %arg3: memref<3x32xf32, #tpu.memory_space<vmem>>, %arg4: memref<16x32xbf16, #tpu.memory_space<vmem>>) attributes {dimension_semantics = [#tpu.dimension_semantics<parallel>], iteration_bounds = array<i64: 2>, scalar_prefetch = 0 : i64, scratch_operands = 0 : i64, tpu.core_type = #tpu.core_type<tc>, window_params = [{transform_indices = @transform_0, window_bounds = array<i64: 16, 144>}, {pipeline_mode = #tpu.pipeline_mode<synchronous>, transform_indices = @transform_1, window_bounds = array<i64: 144, 32>}, {pipeline_mode = #tpu.pipeline_mode<synchronous>, transform_indices = @transform_2, window_bounds = array<i64: 3, 32>}, {transform_indices = @transform_3, window_bounds = array<i64: 16, 32>}]} {
    %c0 = arith.constant 0 : index
    %c0_0 = arith.constant 0 : index
    %0 = vector.load %arg1[%c0, %c0_0] : memref<16x144xbf16, #tpu.memory_space<vmem>>, vector<16x144xbf16>
    %c0_1 = arith.constant 0 : index
    %c0_2 = arith.constant 0 : index
    %1 = vector.load %arg2[%c0_1, %c0_2] : memref<144x32xbf16, #tpu.memory_space<vmem>>, vector<144x32xbf16>
    %cst = arith.constant dense<0.000000e+00> : vector<16x32xf32>
    %2 = tpu.matmul %0, %1, %cst {dimension_numbers = #tpu.dot_dimension_numbers<[1], [0], [0], [1], [0, 0, 1, 1], [], []>} : vector<16x144xbf16>, vector<144x32xbf16>, vector<16x32xf32> -> vector<16x32xf32>
    %c0_3 = arith.constant 0 : index
    %c0_4 = arith.constant 0 : index
    %3 = vector.load %arg3[%c0_3, %c0_4] : memref<3x32xf32, #tpu.memory_space<vmem>>, vector<1x32xf32>
    %4 = vector.broadcast %3 : vector<1x32xf32> to vector<16x32xf32>
    %5 = arith.addf %2, %4 : vector<16x32xf32>
    %cst_5 = arith.constant 2.000000e-01 : f32
    %6 = vector.broadcast %cst_5 : f32 to vector<16x32xf32>
    %7 = arith.mulf %6, %5 : vector<16x32xf32>
    %8 = arith.maximumf %5, %7 : vector<16x32xf32>
    %c1 = arith.constant 1 : index
    %c0_6 = arith.constant 0 : index
    %9 = vector.load %arg3[%c1, %c0_6] : memref<3x32xf32, #tpu.memory_space<vmem>>, vector<1x32xf32>
    %10 = vector.broadcast %9 : vector<1x32xf32> to vector<16x32xf32>
    %11 = arith.mulf %8, %10 : vector<16x32xf32>
    %c2 = arith.constant 2 : index
    %c0_7 = arith.constant 0 : index
    %12 = vector.load %arg3[%c2, %c0_7] : memref<3x32xf32, #tpu.memory_space<vmem>>, vector<1x32xf32>
    %13 = vector.broadcast %12 : vector<1x32xf32> to vector<16x32xf32>
    %14 = arith.addf %11, %13 : vector<16x32xf32>
    %15 = arith.truncf %14 : vector<16x32xf32> to vector<16x32xbf16>
    %c0_8 = arith.constant 0 : index
    %c0_9 = arith.constant 0 : index
    %16 = vector.load %arg4[%c0_8, %c0_9] : memref<16x32xbf16, #tpu.memory_space<vmem>>, vector<16x32xbf16>
    tpu.vector_store %arg4[%c0_8, %c0_9], %15 {strides = array<i32>} : memref<16x32xbf16, #tpu.memory_space<vmem>>, vector<16x32xbf16>,
    return
  }
  func.func @transform_0(%arg0: i32) -> (i32, i32) {
    %c0_i32 = arith.constant 0 : i32
    %c0_i32_0 = arith.constant 0 : i32
    return %arg0, %c0_i32 : i32, i32
  }
  func.func @transform_1(%arg0: i32) -> (i32, i32) {
    %c0_i32 = arith.constant 0 : i32
    %c0_i32_0 = arith.constant 0 : i32
    %c0_i32_1 = arith.constant 0 : i32
    return %c0_i32, %c0_i32_0 : i32, i32
  }
  func.func @transform_2(%arg0: i32) -> (i32, i32) {
    %c0_i32 = arith.constant 0 : i32
    %c0_i32_0 = arith.constant 0 : i32
    %c0_i32_1 = arith.constant 0 : i32
    return %c0_i32, %c0_i32_0 : i32, i32
  }
  func.func @transform_3(%arg0: i32) -> (i32, i32) {
    %c0_i32 = arith.constant 0 : i32
    %c0_i32_0 = arith.constant 0 : i32
    return %arg0, %c0_i32 : i32, i32
  }
}

module attributes {stable_mosaic.version = 11 : i64} {
  func.func @_conv_block_kernel(%arg0: i32, %arg1: memref<16x288xbf16, #tpu.memory_space<vmem>>, %arg2: memref<288x64xbf16, #tpu.memory_space<vmem>>, %arg3: memref<3x64xf32, #tpu.memory_space<vmem>>, %arg4: memref<16x64xbf16, #tpu.memory_space<vmem>>) attributes {dimension_semantics = [#tpu.dimension_semantics<parallel>], iteration_bounds = array<i64: 1>, scalar_prefetch = 0 : i64, scratch_operands = 0 : i64, tpu.core_type = #tpu.core_type<tc>, window_params = [{transform_indices = @transform_0, window_bounds = array<i64: 16, 288>}, {pipeline_mode = #tpu.pipeline_mode<synchronous>, transform_indices = @transform_1, window_bounds = array<i64: 288, 64>}, {pipeline_mode = #tpu.pipeline_mode<synchronous>, transform_indices = @transform_2, window_bounds = array<i64: 3, 64>}, {transform_indices = @transform_3, window_bounds = array<i64: 16, 64>}]} {
    %c0 = arith.constant 0 : index
    %c0_0 = arith.constant 0 : index
    %0 = vector.load %arg1[%c0, %c0_0] : memref<16x288xbf16, #tpu.memory_space<vmem>>, vector<16x288xbf16>
    %c0_1 = arith.constant 0 : index
    %c0_2 = arith.constant 0 : index
    %1 = vector.load %arg2[%c0_1, %c0_2] : memref<288x64xbf16, #tpu.memory_space<vmem>>, vector<288x64xbf16>
    %cst = arith.constant dense<0.000000e+00> : vector<16x64xf32>
    %2 = tpu.matmul %0, %1, %cst {dimension_numbers = #tpu.dot_dimension_numbers<[1], [0], [0], [1], [0, 0, 1, 1], [], []>} : vector<16x288xbf16>, vector<288x64xbf16>, vector<16x64xf32> -> vector<16x64xf32>
    %c0_3 = arith.constant 0 : index
    %c0_4 = arith.constant 0 : index
    %3 = vector.load %arg3[%c0_3, %c0_4] : memref<3x64xf32, #tpu.memory_space<vmem>>, vector<1x64xf32>
    %4 = vector.broadcast %3 : vector<1x64xf32> to vector<16x64xf32>
    %5 = arith.addf %2, %4 : vector<16x64xf32>
    %cst_5 = arith.constant 2.000000e-01 : f32
    %6 = vector.broadcast %cst_5 : f32 to vector<16x64xf32>
    %7 = arith.mulf %6, %5 : vector<16x64xf32>
    %8 = arith.maximumf %5, %7 : vector<16x64xf32>
    %c1 = arith.constant 1 : index
    %c0_6 = arith.constant 0 : index
    %9 = vector.load %arg3[%c1, %c0_6] : memref<3x64xf32, #tpu.memory_space<vmem>>, vector<1x64xf32>
    %10 = vector.broadcast %9 : vector<1x64xf32> to vector<16x64xf32>
    %11 = arith.mulf %8, %10 : vector<16x64xf32>
    %c2 = arith.constant 2 : index
    %c0_7 = arith.constant 0 : index
    %12 = vector.load %arg3[%c2, %c0_7] : memref<3x64xf32, #tpu.memory_space<vmem>>, vector<1x64xf32>
    %13 = vector.broadcast %12 : vector<1x64xf32> to vector<16x64xf32>
    %14 = arith.addf %11, %13 : vector<16x64xf32>
    %15 = arith.truncf %14 : vector<16x64xf32> to vector<16x64xbf16>
    %c0_8 = arith.constant 0 : index
    %c0_9 = arith.constant 0 : index
    %16 = vector.load %arg4[%c0_8, %c0_9] : memref<16x64xbf16, #tpu.memory_space<vmem>>, vector<16x64xbf16>
    tpu.vector_store %arg4[%c0_8, %c0_9], %15 {strides = array<i32>} : memref<16x64xbf16, #tpu.memory_space<vmem>>, vector<16x64xbf16>,
    return
  }
  func.func @transform_0(%arg0: i32) -> (i32, i32) {
    %c0_i32 = arith.constant 0 : i32
    %c0_i32_0 = arith.constant 0 : i32
    return %arg0, %c0_i32 : i32, i32
  }
  func.func @transform_1(%arg0: i32) -> (i32, i32) {
    %c0_i32 = arith.constant 0 : i32
    %c0_i32_0 = arith.constant 0 : i32
    %c0_i32_1 = arith.constant 0 : i32
    return %c0_i32, %c0_i32_0 : i32, i32
  }
  func.func @transform_2(%arg0: i32) -> (i32, i32) {
    %c0_i32 = arith.constant 0 : i32
    %c0_i32_0 = arith.constant 0 : i32
    %c0_i32_1 = arith.constant 0 : i32
    return %c0_i32, %c0_i32_0 : i32, i32
  }
  func.func @transform_3(%arg0: i32) -> (i32, i32) {
    %c0_i32 = arith.constant 0 : i32
    %c0_i32_0 = arith.constant 0 : i32
    return %arg0, %c0_i32 : i32, i32
  }
}

module attributes {stable_mosaic.version = 11 : i64} {
  func.func @_block_heads_kernel(%arg0: i32, %arg1: memref<16x576xbf16, #tpu.memory_space<vmem>>, %arg2: memref<576x128xbf16, #tpu.memory_space<vmem>>, %arg3: memref<3x128xf32, #tpu.memory_space<vmem>>, %arg4: memref<128x11xbf16, #tpu.memory_space<vmem>>, %arg5: memref<1x11xf32, #tpu.memory_space<vmem>>, %arg6: memref<16x11xf32, #tpu.memory_space<vmem>>) attributes {dimension_semantics = [#tpu.dimension_semantics<parallel>], iteration_bounds = array<i64: 1>, scalar_prefetch = 0 : i64, scratch_operands = 0 : i64, tpu.core_type = #tpu.core_type<tc>, window_params = [{transform_indices = @transform_0, window_bounds = array<i64: 16, 576>}, {pipeline_mode = #tpu.pipeline_mode<synchronous>, transform_indices = @transform_1, window_bounds = array<i64: 576, 128>}, {pipeline_mode = #tpu.pipeline_mode<synchronous>, transform_indices = @transform_2, window_bounds = array<i64: 3, 128>}, {pipeline_mode = #tpu.pipeline_mode<synchronous>, transform_indices = @transform_3, window_bounds = array<i64: 128, 11>}, {pipeline_mode = #tpu.pipeline_mode<synchronous>, transform_indices = @transform_4, window_bounds = array<i64: 1, 11>}, {transform_indices = @transform_5, window_bounds = array<i64: 16, 11>}]} {
    %c0 = arith.constant 0 : index
    %c0_0 = arith.constant 0 : index
    %0 = vector.load %arg1[%c0, %c0_0] : memref<16x576xbf16, #tpu.memory_space<vmem>>, vector<16x576xbf16>
    %c0_1 = arith.constant 0 : index
    %c0_2 = arith.constant 0 : index
    %1 = vector.load %arg2[%c0_1, %c0_2] : memref<576x128xbf16, #tpu.memory_space<vmem>>, vector<576x128xbf16>
    %cst = arith.constant dense<0.000000e+00> : vector<16x128xf32>
    %2 = tpu.matmul %0, %1, %cst {dimension_numbers = #tpu.dot_dimension_numbers<[1], [0], [0], [1], [0, 0, 1, 1], [], []>} : vector<16x576xbf16>, vector<576x128xbf16>, vector<16x128xf32> -> vector<16x128xf32>
    %c0_3 = arith.constant 0 : index
    %c0_4 = arith.constant 0 : index
    %3 = vector.load %arg3[%c0_3, %c0_4] : memref<3x128xf32, #tpu.memory_space<vmem>>, vector<1x128xf32>
    %4 = vector.broadcast %3 : vector<1x128xf32> to vector<16x128xf32>
    %5 = arith.addf %2, %4 : vector<16x128xf32>
    %cst_5 = arith.constant 2.000000e-01 : f32
    %6 = vector.broadcast %cst_5 : f32 to vector<16x128xf32>
    %7 = arith.mulf %6, %5 : vector<16x128xf32>
    %8 = arith.maximumf %5, %7 : vector<16x128xf32>
    %c1 = arith.constant 1 : index
    %c0_6 = arith.constant 0 : index
    %9 = vector.load %arg3[%c1, %c0_6] : memref<3x128xf32, #tpu.memory_space<vmem>>, vector<1x128xf32>
    %10 = vector.broadcast %9 : vector<1x128xf32> to vector<16x128xf32>
    %11 = arith.mulf %8, %10 : vector<16x128xf32>
    %c2 = arith.constant 2 : index
    %c0_7 = arith.constant 0 : index
    %12 = vector.load %arg3[%c2, %c0_7] : memref<3x128xf32, #tpu.memory_space<vmem>>, vector<1x128xf32>
    %13 = vector.broadcast %12 : vector<1x128xf32> to vector<16x128xf32>
    %14 = arith.addf %11, %13 : vector<16x128xf32>
    %15 = arith.truncf %14 : vector<16x128xf32> to vector<16x128xbf16>
    %c0_8 = arith.constant 0 : index
    %c0_9 = arith.constant 0 : index
    %16 = vector.load %arg4[%c0_8, %c0_9] : memref<128x11xbf16, #tpu.memory_space<vmem>>, vector<128x11xbf16>
    %cst_10 = arith.constant dense<0.000000e+00> : vector<16x11xf32>
    %17 = tpu.matmul %15, %16, %cst_10 {dimension_numbers = #tpu.dot_dimension_numbers<[1], [0], [0], [1], [0, 0, 1, 1], [], []>} : vector<16x128xbf16>, vector<128x11xbf16>, vector<16x11xf32> -> vector<16x11xf32>
    %c0_11 = arith.constant 0 : index
    %c0_12 = arith.constant 0 : index
    %18 = vector.load %arg5[%c0_11, %c0_12] : memref<1x11xf32, #tpu.memory_space<vmem>>, vector<1x11xf32>
    %19 = vector.broadcast %18 : vector<1x11xf32> to vector<16x11xf32>
    %20 = arith.addf %17, %19 : vector<16x11xf32>
    %21 = tpu.iota {dimensions = array<i32: 1>} : vector<16x11xi32>
    %cst_13 = arith.constant 0.000000e+00 : f32
    %22 = vector.broadcast %cst_13 : f32 to vector<16x11xf32>
    %23 = arith.subf %22, %20 : vector<16x11xf32>
    %24 = math.exp %23 : vector<16x11xf32>
    %cst_14 = arith.constant 1.000000e+00 : f32
    %25 = vector.broadcast %cst_14 : f32 to vector<16x11xf32>
    %26 = arith.addf %25, %24 : vector<16x11xf32>
    %cst_15 = arith.constant 1.000000e+00 : f32
    %27 = vector.broadcast %cst_15 : f32 to vector<16x11xf32>
    %28 = arith.divf %27, %26 : vector<16x11xf32>
    %c1_i32 = arith.constant 1 : i32
    %29 = vector.broadcast %c1_i32 : i32 to vector<16x11xi32>
    %30 = arith.cmpi sge, %21, %29 : vector<16x11xi32>
    %cst_16 = arith.constant -1.000000e+30 : f32
    %31 = vector.broadcast %cst_16 : f32 to vector<16x11xf32>
    %32 = arith.select %30, %20, %31 : vector<16x11xi1>, vector<16x11xf32>
    %cst_17 = arith.constant dense<0xFF800000> : vector<16xf32>
    %33 = vector.multi_reduction <maximumf>, %32, %cst_17 [1] : vector<16x11xf32> to vector<16xf32>
    %34 = vector.shape_cast %33 : vector<16xf32> to vector<16x1xf32>
    %35 = vector.broadcast %34 : vector<16x1xf32> to vector<16x11xf32>
    %36 = arith.subf %32, %35 : vector<16x11xf32>
    %37 = math.exp %36 : vector<16x11xf32>
    %cst_18 = arith.constant dense<0.000000e+00> : vector<16xf32>
    %38 = vector.multi_reduction <add>, %37, %cst_18 [1] : vector<16x11xf32> to vector<16xf32>
    %39 = vector.shape_cast %38 : vector<16xf32> to vector<16x1xf32>
    %40 = vector.broadcast %39 : vector<16x1xf32> to vector<16x11xf32>
    %41 = arith.divf %37, %40 : vector<16x11xf32>
    %c0_i32 = arith.constant 0 : i32
    %42 = vector.broadcast %c0_i32 : i32 to vector<16x11xi32>
    %43 = arith.cmpi eq, %21, %42 : vector<16x11xi32>
    %44 = arith.select %43, %28, %41 : vector<16x11xi1>, vector<16x11xf32>
    %c0_19 = arith.constant 0 : index
    %c0_20 = arith.constant 0 : index
    %45 = vector.load %arg6[%c0_19, %c0_20] : memref<16x11xf32, #tpu.memory_space<vmem>>, vector<16x11xf32>
    tpu.vector_store %arg6[%c0_19, %c0_20], %44 {strides = array<i32>} : memref<16x11xf32, #tpu.memory_space<vmem>>, vector<16x11xf32>,
    return
  }
  func.func @transform_0(%arg0: i32) -> (i32, i32) {
    %c0_i32 = arith.constant 0 : i32
    %c0_i32_0 = arith.constant 0 : i32
    return %arg0, %c0_i32 : i32, i32
  }
  func.func @transform_1(%arg0: i32) -> (i32, i32) {
    %c0_i32 = arith.constant 0 : i32
    %c0_i32_0 = arith.constant 0 : i32
    %c0_i32_1 = arith.constant 0 : i32
    return %c0_i32, %c0_i32_0 : i32, i32
  }
  func.func @transform_2(%arg0: i32) -> (i32, i32) {
    %c0_i32 = arith.constant 0 : i32
    %c0_i32_0 = arith.constant 0 : i32
    %c0_i32_1 = arith.constant 0 : i32
    return %c0_i32, %c0_i32_0 : i32, i32
  }
  func.func @transform_3(%arg0: i32) -> (i32, i32) {
    %c0_i32 = arith.constant 0 : i32
    %c0_i32_0 = arith.constant 0 : i32
    %c0_i32_1 = arith.constant 0 : i32
    return %c0_i32, %c0_i32_0 : i32, i32
  }
  func.func @transform_4(%arg0: i32) -> (i32, i32) {
    %c0_i32 = arith.constant 0 : i32
    %c0_i32_0 = arith.constant 0 : i32
    %c0_i32_1 = arith.constant 0 : i32
    return %c0_i32, %c0_i32_0 : i32, i32
  }
  func.func @transform_5(%arg0: i32) -> (i32, i32) {
    %c0_i32 = arith.constant 0 : i32
    %c0_i32_0 = arith.constant 0 : i32
    return %arg0, %c0_i32 : i32, i32
  }
}

</mosaic_0001>

<bundles_post_ra>
// kernel: discriminator_forward.4
= control target key start
LH: loop header
LB: loop body
LE: loop exit
PB: predicated region body
PF: predicated region fallthrough
CT: control target
= control target key end

     0   :  { %s538_s12 = smov 0   ;;  %s582_s0 = inlined_call_operand.vmem [shape: bf16[128,9], index: 0, kind: input, shape index: {}]   ;;  %s583_s1 = inlined_call_operand.vmem [shape: bf16[9,16], index: 1, kind: input, shape index: {}]   ;;  %s584_s2 = inlined_call_operand.vmem [shape: f32[3,16], index: 2, kind: input, shape index: {}]   ;;  %s585_s3 = inlined_call_operand.vmem [shape: bf16[128,16], index: 3, kind: output, shape index: {}]  }
   0x1 LB: > { %s439_s13 = sadd.s32 4294967295, %s515_s12   ;;  %p443_p0 = scmp.ge.s32.totalorder %s515_s12, 1  ;;  %s515_s12 = sphi %s538_s12, %s13_s12  }
   0x2   : > { %p138_p1 = scmp.lt.s32.totalorder %s515_s12, 3 }
   0x4   : > { %p139_p2 = pnand %p443_p0, %p138_p1 }
   0x5   : > { %v504_v0 = vld [vmem:[%s583_s1] sm:$0x1f] (!%p139_p2)   ;;  %vm228_vm0 = vcmask (!%p139_p2), 1043456   ;;  %vm229_vm1 = vcmask (!%p139_p2), 1044480   ;;  %s444_s16 = sshll.u32 (!%p139_p2), %s439_s13, 3  ;;  %v517_v1 = vmov (!%p139_p2), 65535  }
   0x6   : > { %142 = sbr.rel (%p139_p2) target bundleno = 246 (0xf6), region = 32  ;;  %v230_v2 = vsel (!%p139_p2), %vm228_vm0, 4294967295, %v517_v1  ;;  %p163_p3 = scmp.lt.s32.totalorder (!%p139_p2), %s444_s16, 15  ;;  %vm215_vm2 = vcmask (!%p139_p2), 72704   ;;  %v448_v9 = vld [vmem:[%s584_s2] ss:$0 sm:$0xff] (!%p139_p2) }
   0x7   : > { %v231_v3 = vsel (!%p139_p2), %vm229_vm1, %v230_v2, 0  ;;  %v458_v14 = vld [vmem:[%s584_s2 + $0x1] ss:$0 sm:$0xff] (!%p139_p2)  ;;  %vm374_vm3 = vcmask (!%p139_p2), 125952   ;;  %v459_v33 = vld [vmem:[%s584_s2 + $0x2] ss:$0 sm:$0xff] (!%p139_p2) }
   0x8   : > { %v233_v4 = vand.u32 (!%p139_p2), %v504_v0, %v231_v3 }
   0xa   : > { %483 = vmatprep.subr.bf16.mxu0 (!%p139_p2), %v233_v4  ;;  %493 = vmatprep.subr.bf16.mxu1 (!%p139_p2), %v233_v4 }
   0xb   : > { %484 = vmatpush3.bf16.msra.mxu0 (!%p139_p2), %v233_v4  ;;  %494 = vmatpush3.bf16.msra.mxu1 (!%p139_p2), %v233_v4 }
   0xd   : > { %s587_s16 = smov (!%p163_p3, %s444_s16), 15 }
   0xe   : > { %s445_s17 = sshll.u32 %s587_s16, 2 }
   0xf   : > { %s166_s20 = scalar_lea.vmem %s582_s0, %s445_s17  ;;  %s172_s29 = scalar_lea.vmem %s585_s3, %s445_s17 }
  0x10   : > { %v505_v5 = vld [vmem:[%s166_s20] sm:$0xff]   ;;  %v506_v6 = vld [vmem:[%s166_s20 + $0x10] sm:$0xff]   ;;  %v507_v7 = vld [vmem:[%s166_s20 + $0x8] sm:$0xff]  }
  0x11   : > { %485 = vmatprep.mubr.msk.bf16.mxu0 %vm215_vm2, %v505_v5  ;;  %489 = vmatprep.mubr.msk.bf16.mxu1 %vm215_vm2, %v506_v6  ;;  %v508_v8 = vld [vmem:[%s166_s20 + $0x18] sm:$0xff]  }
  0x12   : > { %486 = vmatmul.mubr.msk.bf16.vlgmr.msra.gmra.mrb[0].mxu0 %vm215_vm2, %v507_v7  ;;  %490 = vmatmul.mubr.msk.bf16.vlgmr.msra.gmra.mrb[0].mxu1 %vm215_vm2, %v508_v8 }
  0xe5   : > { %v487_v10 = vpop.f32.mrb[0].mxu0  ;;  %v491_v12 = vpop.f32.mrb[0].mxu1 }
  0xe6   : > { %v278_v11 = vadd.f32 %v487_v10, %v448_v9  ;;  %v269_v13 = vpop.f32.mrb[1].mxu0  ;;  %v294_v15 = vadd.f32 %v491_v12, %v448_v9  ;;  %v285_v17 = vpop.f32.mrb[1].mxu1 }
  0xe7   : > { %v270_v16 = vadd.f32 %v448_v9, %v269_v13  ;;  %v488_v18 = vpop.f32.mrb[2].mxu0  ;;  %v286_v20 = vadd.f32 %v448_v9, %v285_v17  ;;  %v492_v22 = vpop.f32.mrb[2].mxu1 }
  0xe8   : > { %v302_v19 = vmul.f32 0.2, %v278_v11  ;;  %v281_v21 = vadd.f32 %v488_v18, %v448_v9  ;;  %v272_v23 = vpop.f32.mrb[3].mxu0  ;;  %v306_v24 = vmul.f32 0.2, %v294_v15  ;;  %v297_v26 = vadd.f32 %v492_v22, %v448_v9  ;;  %v288_v28 = vpop.f32.mrb[3].mxu1 }
  0xe9   : > { %v300_v25 = vmul.f32 0.2, %v270_v16  ;;  %v273_v27 = vadd.f32 %v448_v9, %v272_v23  ;;  %v304_v30 = vmul.f32 0.2, %v286_v20  ;;  %v289_v32 = vadd.f32 %v448_v9, %v288_v28 }
  0xea   : > { %v310_v29 = vmax.f32 %v278_v11, %v302_v19  ;;  %v303_v31 = vmul.f32 0.2, %v281_v21  ;;  %v314_v34 = vmax.f32 %v294_v15, %v306_v24  ;;  %v307_v36 = vmul.f32 0.2, %v297_v26 }
  0xeb   : > { %v308_v35 = vmax.f32 %v270_v16, %v300_v25  ;;  %v301_v37 = vmul.f32 0.2, %v273_v27  ;;  %v312_v39 = vmax.f32 %v286_v20, %v304_v30  ;;  %v305_v41 = vmul.f32 0.2, %v289_v32 }
  0xec   : > { %v323_v38 = vmul.f32 %v458_v14, %v310_v29  ;;  %v311_v40 = vmax.f32 %v281_v21, %v303_v31  ;;  %v327_v42 = vmul.f32 %v458_v14, %v314_v34  ;;  %v315_v44 = vmax.f32 %v297_v26, %v307_v36 }
  0xed   : > { %v321_v43 = vmul.f32 %v458_v14, %v308_v35  ;;  %v309_v45 = vmax.f32 %v273_v27, %v301_v37  ;;  %v325_v47 = vmul.f32 %v458_v14, %v312_v39  ;;  %v313_v49 = vmax.f32 %v289_v32, %v305_v41 }
  0xee   : > { %v336_v46 = vadd.f32 %v459_v33, %v323_v38  ;;  %v324_v48 = vmul.f32 %v458_v14, %v311_v40  ;;  %v340_v50 = vadd.f32 %v459_v33, %v327_v42  ;;  %v328_v52 = vmul.f32 %v458_v14, %v315_v44 }
  0xef   : > { %v334_v51 = vadd.f32 %v459_v33, %v321_v43  ;;  %v322_v53 = vmul.f32 %v458_v14, %v309_v45  ;;  %v338_v55 = vadd.f32 %v459_v33, %v325_v47  ;;  %v326_v57 = vmul.f32 %v458_v14, %v313_v49 }
  0xf0   : > { %v472_v54 = vpack.c.bf16 %v336_v46, %v336_v46  ;;  %v337_v56 = vadd.f32 %v459_v33, %v324_v48  ;;  %v476_v58 = vpack.c.bf16 %v340_v50, %v340_v50  ;;  %v341_v60 = vadd.f32 %v459_v33, %v328_v52 }
  0xf1   : > { %v470_v59 = vpack.c.bf16 %v334_v51, %v334_v51  ;;  %v335_v61 = vadd.f32 %v459_v33, %v322_v53  ;;  %v474_v62 = vpack.c.bf16 %v338_v55, %v338_v55  ;;  %v339_v0 = vadd.f32 %v459_v33, %v326_v57 }
  0xf2   : > { %377 = vst.msk [vmem:[%s172_s29 + $0x8] sm:$0xf] %vm374_vm3, %v472_v54  ;;  %v473_v63 = vpack.c.bf16 %v337_v56, %v337_v56  ;;  %381 = vst.msk [vmem:[%s172_s29 + $0x18] sm:$0xf] %vm374_vm3, %v476_v58  ;;  %v477_v1 = vpack.c.bf16 %v341_v60, %v341_v60 }
  0xf3   : > { %375 = vst.msk [vmem:[%s172_s29] sm:$0xf] %vm374_vm3, %v470_v59  ;;  %v471_v2 = vpack.c.bf16 %v335_v61, %v335_v61  ;;  %379 = vst.msk [vmem:[%s172_s29 + $0x10] sm:$0xf] %vm374_vm3, %v474_v62  ;;  %v475_v3 = vpack.c.bf16 %v339_v0, %v339_v0 }
  0xf4   : > { %378 = vst.msk [vmem:[%s172_s29 + $0xc] sm:$0xf] %vm374_vm3, %v473_v63  ;;  %382 = vst.msk [vmem:[%s172_s29 + $0x1c] sm:$0xf] %vm374_vm3, %v477_v1 }
  0xf5   : > { %376 = vst.msk [vmem:[%s172_s29 + $0x4] sm:$0xf] %vm374_vm3, %v471_v2  ;;  %380 = vst.msk [vmem:[%s172_s29 + $0x14] sm:$0xf] %vm374_vm3, %v475_v3 }
  0xf6 PF: > { %s13_s12 = sadd.s32 1, %s515_s12  }
  0xf7   : > { %p10_p4 = scmp.ge.s32.totalorder %s13_s12, 4  }
  0xf9   :  { %12 = sbr.rel (!%p10_p4) target bundleno = 1 (0x1), region = 62 }

// kernel: discriminator_forward.5
= control target key start
LH: loop header
LB: loop body
LE: loop exit
PB: predicated region body
PF: predicated region fallthrough
CT: control target
= control target key end

     0   :  { %s478_s12 = smov 0   ;;  %s535_s0 = inlined_call_operand.vmem [shape: bf16[32,144], index: 0, kind: input, shape index: {}]   ;;  %s536_s1 = inlined_call_operand.vmem [shape: bf16[144,32], index: 1, kind: input, shape index: {}]   ;;  %s537_s2 = inlined_call_operand.vmem [shape: f32[3,32], index: 2, kind: input, shape index: {}]   ;;  %s538_s3 = inlined_call_operand.vmem [shape: bf16[32,32], index: 3, kind: output, shape index: {}]  }
   0x1 LB: > { %s396_s13 = sadd.s32 4294967295, %s455_s12   ;;  %p400_p0 = scmp.ge.s32.totalorder %s455_s12, 1  ;;  %s455_s12 = sphi %s478_s12, %s13_s12  }
   0x2   : > { %p139_p1 = scmp.lt.s32.totalorder %s455_s12, 3 }
   0x4   : > { %p140_p2 = pnand %p400_p0, %p139_p1 }
   0x5   : > { %v437_v0 = vld [vmem:[%s536_s1] sm:$0xff] (!%p140_p2)   ;;  %v457_v1 = vmov (!%p140_p2), 0   ;;  %s401_s16 = sshll.u32 (!%p140_p2), %s396_s13, 1  ;;  %v438_v2 = vld [vmem:[%s536_s1 + $0x8] sm:$0xff] (!%p140_p2)   ;;  %v439_v3 = vld [vmem:[%s536_s1 + $0x10] sm:$0xff] (!%p140_p2)   ;;  %vm266_vm0 = vcmask (!%p140_p2), 130048  }
   0x6   : > { %143 = sbr.rel (%p140_p2) target bundleno = 269 (0x10d), region = 32  ;;  %270 = vmatprep.subr.bf16.mxu0 (!%p140_p2), %v457_v1  ;;  %p165_p3 = scmp.lt.s32.totalorder (!%p140_p2), %s401_s16, 3  ;;  %v440_v4 = vld [vmem:[%s536_s1 + $0x18] sm:$0xff] (!%p140_p2)   ;;  %v441_v6 = vld [vmem:[%s536_s1 + $0x20] sm:$0xff] (!%p140_p2)   ;;  %v442_v7 = vld [vmem:[%s536_s1 + $0x28] sm:$0xff] (!%p140_p2)   ;;  %vm337_vm1 = vcmask (!%p140_p2), 257024  }
   0x7   : > { %271 = vmatpush1.bf16.msra.mxu0 (!%p140_p2), %v437_v0  ;;  %v443_v8 = vld [vmem:[%s536_s1 + $0x30] sm:$0xff] (!%p140_p2)   ;;  %v444_v9 = vld [vmem:[%s536_s1 + $0x38] sm:$0xff] (!%p140_p2)   ;;  %v445_v10 = vld [vmem:[%s536_s1 + $0x40] sm:$0xff] (!%p140_p2)  }
   0x8   : > { %272 = vmatprep.subr.bf16.mxu0 (!%p140_p2), %v457_v1  ;;  %v406_v12 = vld [vmem:[%s537_s2] ss:$0 sm:$0xff] (!%p140_p2)  ;;  %v419_v20 = vld [vmem:[%s537_s2 + $0x1] ss:$0 sm:$0xff] (!%p140_p2)  ;;  %v420_v23 = vld [vmem:[%s537_s2 + $0x2] ss:$0 sm:$0xff] (!%p140_p2) }
   0xb   : > { %273 = vmatpush1.bf16.msra.mxu0 (!%p140_p2), %v438_v2 }
   0xc   : > { %274 = vmatprep.subr.bf16.mxu0 (!%p140_p2), %v457_v1 }
   0xd   : > { %s540_s16 = smov (!%p165_p3, %s401_s16), 3 }
   0xe   : > { %s425_s21 = sshll.u32 %s540_s16, 3  ;;  %s405_s18 = sshll.u32 %s540_s16, 2 }
   0xf   : > { %s169_s24 = scalar_lea.vmem %s535_s0, %s425_s21  ;;  %275 = vmatpush1.bf16.msra.mxu0 %v439_v3  ;;  %s175_s21 = scalar_lea.vmem %s538_s3, %s405_s18 }
  0x10   : > { %v448_v5 = vld [vmem:[%s169_s24 + $0x4] ss:$8 sps:$4 sm:$0xff]   ;;  %276 = vmatprep.subr.bf16.mxu0 %v457_v1  ;;  %v446_v11 = vld [vmem:[%s169_s24] ss:$8 sps:$4 sm:$0xff]  }
  0x11   : > { %418 = vmatprep.mubr.msk.bf16.mxu0 %vm266_vm0, %v448_v5 }
  0x13   : > { %277 = vmatpush1.bf16.msra.mxu0 %v440_v4 }
  0x14   : > { %278 = vmatprep.subr.bf16.mxu0 %v457_v1 }
  0x17   : > { %279 = vmatpush1.bf16.msra.mxu0 %v441_v6 }
  0x18   : > { %280 = vmatprep.subr.bf16.mxu0 %v457_v1 }
  0x1b   : > { %281 = vmatpush1.bf16.msra.mxu0 %v442_v7 }
  0x1c   : > { %282 = vmatprep.subr.bf16.mxu0 %v457_v1 }
  0x1f   : > { %283 = vmatpush1.bf16.msra.mxu0 %v443_v8 }
  0x20   : > { %284 = vmatprep.subr.bf16.mxu0 %v457_v1 }
  0x23   : > { %285 = vmatpush1.bf16.msra.mxu0 %v444_v9 }
  0x24   : > { %286 = vmatprep.subr.bf16.mxu0 %v457_v1 }
  0x27   : > { %287 = vmatpush1.bf16.msra.mxu0 %v445_v10 }
  0x2a   : > { %303 = vmatmul.mubr.bf16.vlgmr.msra.gmra.mrb[0].mxu0 %v446_v11 }
  0xfd   : > { %v304_v13 = vpop.f32.mrb[0].mxu0 }
  0xfe   : > { %v305_v14 = vadd.f32 %v406_v12, %v304_v13  ;;  %v306_v15 = vpop.f32.mrb[1].mxu0 }
  0xff   : > { %v307_v16 = vpop.f32.mrb[2].mxu0 }
 0x100   : > { %v311_v17 = vmul.f32 0.2, %v305_v14  ;;  %v308_v18 = vadd.f32 %v406_v12, %v307_v16  ;;  %v309_v19 = vpop.f32.mrb[3].mxu0 }
 0x102   : > { %v313_v21 = vmax.f32 %v305_v14, %v311_v17  ;;  %v312_v22 = vmul.f32 0.2, %v308_v18 }
 0x104   : > { %v320_v24 = vmul.f32 %v419_v20, %v313_v21  ;;  %v314_v25 = vmax.f32 %v308_v18, %v312_v22 }
 0x106   : > { %v327_v26 = vadd.f32 %v420_v23, %v320_v24  ;;  %v321_v27 = vmul.f32 %v419_v20, %v314_v25 }
 0x108   : > { %v426_v28 = vpack.c.bf16 %v327_v26, %v327_v26  ;;  %v328_v29 = vadd.f32 %v420_v23, %v321_v27 }
 0x10a   : > { %338 = vst.msk [vmem:[%s175_s21] sm:$0xf] %vm337_vm1, %v426_v28  ;;  %v427_v30 = vpack.c.bf16 %v328_v29, %v328_v29 }
 0x10c   : > { %339 = vst.msk [vmem:[%s175_s21 + $0x4] sm:$0xf] %vm337_vm1, %v427_v30 }
 0x10d PF: > { %s13_s12 = sadd.s32 1, %s455_s12  }
 0x10e   : > { %p10_p4 = scmp.ge.s32.totalorder %s13_s12, 4  }
 0x110   :  { %12 = sbr.rel (!%p10_p4) target bundleno = 1 (0x1), region = 62 }

// kernel: discriminator_forward.6
= control target key start
LH: loop header
LB: loop body
LE: loop exit
PB: predicated region body
PF: predicated region fallthrough
CT: control target
= control target key end

     0   :  { %v388_v1 = vmov 0.0   ;;  %vm389_vm0 = vmmov 0   ;;  %vm183_vm1 = vcmask 261120   ;;  %vm295_vm2 = vcmask 519168   ;;  %s488_s1 = inlined_call_operand.vmem [shape: bf16[288,64], index: 1, kind: input, shape index: {}]   ;;  %s489_s0 = inlined_call_operand.vmem [shape: bf16[16,288], index: 0, kind: input, shape index: {}]   ;;  %s490_s2 = inlined_call_operand.vmem [shape: f32[3,64], index: 2, kind: input, shape index: {}]   ;;  %s491_s3 = inlined_call_operand.vmem [shape: bf16[16,64], index: 3, kind: output, shape index: {}]  }
   0x1   :  { %v366_v0 = vld [vmem:[%s488_s1 + $0x40] sm:$0xff]   ;;  %356 = vmatprep.subr.bf16.mxu1 %v388_v1  ;;  %360 = vmatprep.mubr.msk.bf16.mxu1 %vm389_vm0, %v388_v1  ;;  %v368_v3 = vld [vmem:[%s488_s1 + $0x48] sm:$0xff]   ;;  %v370_v5 = vld [vmem:[%s488_s1 + $0x50] sm:$0xff]  }
   0x2   :  { %v367_v2 = vld [vmem:[%s488_s1] sm:$0xff]   ;;  %331 = vmatprep.subr.bf16.mxu0 %v366_v0  ;;  %v369_v4 = vld [vmem:[%s488_s1 + $0x8] sm:$0xff]   ;;  %v371_v6 = vld [vmem:[%s488_s1 + $0x10] sm:$0xff]  }
   0x3   :  { %332 = vmatpush3.bf16.msra.mxu0 %v367_v2  ;;  %v372_v7 = vld [vmem:[%s488_s1 + $0x58] sm:$0xff]   ;;  %v374_v9 = vld [vmem:[%s488_s1 + $0x60] sm:$0xff]   ;;  %v376_v12 = vld [vmem:[%s488_s1 + $0x68] sm:$0xff]  }
   0x4   :  { %333 = vmatprep.subr.bf16.mxu0 %v368_v3  ;;  %v373_v8 = vld [vmem:[%s488_s1 + $0x18] sm:$0xff]   ;;  %v380_v10 = vld [vmem:[%s488_s1 + $0x80] sm:$0xff]   ;;  %v377_v13 = vld [vmem:[%s488_s1 + $0x28] sm:$0xff]  }
   0x5   :  { %v375_v11 = vld [vmem:[%s488_s1 + $0x20] sm:$0xff]   ;;  %357 = vmatpush3.bf16.msra.mxu1 %v380_v10  ;;  %v386_v15 = vld [vmem:[%s488_s1 + $0x88] sm:$0xff]   ;;  %v378_v16 = vld [vmem:[%s488_s1 + $0x70] sm:$0xff]  }
   0x6   :  { %358 = vmatprep.subr.bf16.mxu1 %v388_v1  ;;  %v385_v14 = vld [vmem:[%s489_s0 + $0x4] ss:$12 sps:$4 sm:$0xff]   ;;  %v387_v17 = vld [vmem:[%s489_s0 + $0x8] ss:$12 sps:$4 sm:$0xff]   ;;  %v381_v19 = vld [vmem:[%s488_s1 + $0x78] sm:$0xff]  }
   0x7   :  { %334 = vmatpush3.bf16.msra.mxu0 %v369_v4  ;;  %219 = vmatprep.mubr.bf16.mxu0 %v385_v14  ;;  %v379_v18 = vld [vmem:[%s488_s1 + $0x30] sm:$0xff]   ;;  %v382_v20 = vld [vmem:[%s488_s1 + $0x38] sm:$0xff]   ;;  %v383_v21 = vld [vmem:[%s489_s0] ss:$12 sps:$4 sm:$0xff]  }
   0x8   :  { %335 = vmatprep.subr.bf16.mxu0 %v370_v5  ;;  %v302_v28 = vld [vmem:[%s490_s2] ss:$0 sm:$0xff]  ;;  %v325_v38 = vld [vmem:[%s490_s2 + $0x1] ss:$0 sm:$0xff]  ;;  %v326_v41 = vld [vmem:[%s490_s2 + $0x2] ss:$0 sm:$0xff] }
   0x9   :  { %359 = vmatpush3.bf16.msra.mxu1 %v386_v15 }
   0xb   :  { %336 = vmatpush3.bf16.msra.mxu0 %v371_v6 }
   0xc   :  { %337 = vmatprep.subr.bf16.mxu0 %v372_v7  ;;  %361 = vmatmul.mubr.msk.bf16.vlgmr.msra.gmra.mrb[0].mxu1 %vm183_vm1, %v387_v17 }
   0xf   :  { %338 = vmatpush3.bf16.msra.mxu0 %v373_v8 }
  0x10   :  { %339 = vmatprep.subr.bf16.mxu0 %v374_v9 }
  0x13   :  { %340 = vmatpush3.bf16.msra.mxu0 %v375_v11 }
  0x14   :  { %341 = vmatprep.subr.bf16.mxu0 %v376_v12 }
  0x17   :  { %342 = vmatpush3.bf16.msra.mxu0 %v377_v13 }
  0x18   :  { %343 = vmatprep.subr.bf16.mxu0 %v378_v16 }
  0x1b   :  { %344 = vmatpush3.bf16.msra.mxu0 %v379_v18 }
  0x1c   :  { %345 = vmatprep.subr.bf16.mxu0 %v381_v19 }
  0x1f   :  { %346 = vmatpush3.bf16.msra.mxu0 %v382_v20 }
  0x22   :  { %220 = vmatmul.mubr.bf16.vlgmr.msra.gmra.mrb[0].mxu0 %v383_v21 }
  0xdf   :  { %v262_v22 = vpop.f32.mrb[0].mxu1 }
  0xe0   :  { %v362_v23 = vpop.f32.mrb[1].mxu1 }
  0xe1   :  { %v265_v24 = vpop.f32.mrb[2].mxu1 }
  0xe2   :  { %v363_v25 = vpop.f32.mrb[3].mxu1 }
  0xf5   :  { %v347_v26 = vpop.f32.mrb[0].mxu0 }
  0xf6   :  { %v348_v27 = vpop.f32.mrb[1].mxu0 }
  0xf7   :  { %v349_v29 = vadd.f32 %v348_v27, %v347_v26  ;;  %v350_v30 = vpop.f32.mrb[2].mxu0 }
  0xf8   :  { %v351_v31 = vpop.f32.mrb[3].mxu0 }
  0xf9   :  { %v222_v32 = vadd.f32 %v349_v29, %v302_v28  ;;  %v352_v33 = vadd.f32 %v351_v31, %v350_v30 }
  0xfb   :  { %v263_v34 = vadd.f32 %v262_v22, %v222_v32  ;;  %v225_v35 = vadd.f32 %v352_v33, %v302_v28 }
  0xfd   :  { %v269_v36 = vmul.f32 0.2, %v263_v34  ;;  %v266_v37 = vadd.f32 %v265_v24, %v225_v35 }
  0xff   :  { %v271_v39 = vmax.f32 %v263_v34, %v269_v36  ;;  %v270_v40 = vmul.f32 0.2, %v266_v37 }
 0x101   :  { %v278_v42 = vmul.f32 %v325_v38, %v271_v39  ;;  %v272_v43 = vmax.f32 %v266_v37, %v270_v40 }
 0x103   :  { %v285_v44 = vadd.f32 %v326_v41, %v278_v42  ;;  %v279_v45 = vmul.f32 %v325_v38, %v272_v43 }
 0x105   :  { %v329_v46 = vpack.c.bf16 %v285_v44, %v285_v44  ;;  %v286_v47 = vadd.f32 %v326_v41, %v279_v45 }
 0x107   :  { %296 = vst.msk [vmem:[%s491_s3] sm:$0xf] %vm295_vm2, %v329_v46  ;;  %v330_v48 = vpack.c.bf16 %v286_v47, %v286_v47 }
 0x109   :  { %297 = vst.msk [vmem:[%s491_s3 + $0x4] sm:$0xf] %vm295_vm2, %v330_v48 }

// kernel: discriminator_forward.7
= control target key start
LH: loop header
LB: loop body
LE: loop exit
PB: predicated region body
PF: predicated region fallthrough
CT: control target
= control target key end

     0   :  { %v865_v33 = vmov 0.0   ;;  %vm866_vm0 = vmmov 0   ;;  %vm345_vm1 = vcmask 523264   ;;  %vm620_vm3 = vcmask 89088   ;;  %s1068_s1 = inlined_call_operand.vmem [shape: bf16[576,128], index: 1, kind: input, shape index: {}]   ;;  %s1069_s0 = inlined_call_operand.vmem [shape: bf16[16,576], index: 0, kind: input, shape index: {}]   ;;  %s1070_s3 = inlined_call_operand.vmem [shape: bf16[128,11], index: 3, kind: input, shape index: {}]   ;;  %s1071_s2 = inlined_call_operand.vmem [shape: f32[3,128], index: 2, kind: input, shape index: {}]   ;;  %s1072_s4 = inlined_call_operand.vmem [shape: f32[1,11], index: 4, kind: input, shape index: {}]   ;;  %s1073_s5 = inlined_call_operand.vmem [shape: f32[16,11], index: 5, kind: output, shape index: {}]  }
   0x1   :  { %v798_v0 = vld [vmem:[%s1068_s1 + $0x40] sm:$0xff]   ;;  %v802_v4 = vld [vmem:[%s1068_s1 + $0x48] sm:$0xff]   ;;  %v806_v8 = vld [vmem:[%s1068_s1 + $0x50] sm:$0xff]  }
   0x2   :  { %v799_v1 = vld [vmem:[%s1068_s1] sm:$0xff]   ;;  %706 = vmatprep.subr.bf16.mxu0 %v798_v0  ;;  %v803_v5 = vld [vmem:[%s1068_s1 + $0x8] sm:$0xff]   ;;  %v807_v9 = vld [vmem:[%s1068_s1 + $0x10] sm:$0xff]  }
   0x3   :  { %v800_v2 = vld [vmem:[%s1068_s1 + $0xc0] sm:$0xff]   ;;  %707 = vmatpush3.bf16.msra.mxu0 %v799_v1  ;;  %v804_v6 = vld [vmem:[%s1068_s1 + $0xc8] sm:$0xff]   ;;  %v808_v10 = vld [vmem:[%s1068_s1 + $0xd0] sm:$0xff]  }
   0x4   :  { %v801_v3 = vld [vmem:[%s1068_s1 + $0x80] sm:$0xff]   ;;  %728 = vmatprep.subr.bf16.mxu1 %v800_v2  ;;  %708 = vmatprep.subr.bf16.mxu0 %v802_v4  ;;  %v805_v7 = vld [vmem:[%s1068_s1 + $0x88] sm:$0xff]   ;;  %v809_v11 = vld [vmem:[%s1068_s1 + $0x90] sm:$0xff]  }
   0x5   :  { %729 = vmatpush3.bf16.msra.mxu1 %v801_v3  ;;  %v810_v12 = vld [vmem:[%s1068_s1 + $0x58] sm:$0xff]   ;;  %v814_v16 = vld [vmem:[%s1068_s1 + $0x60] sm:$0xff]   ;;  %v818_v20 = vld [vmem:[%s1068_s1 + $0x68] sm:$0xff]  }
   0x6   :  { %730 = vmatprep.subr.bf16.mxu1 %v804_v6  ;;  %v811_v13 = vld [vmem:[%s1068_s1 + $0x18] sm:$0xff]   ;;  %v815_v17 = vld [vmem:[%s1068_s1 + $0x20] sm:$0xff]   ;;  %v819_v21 = vld [vmem:[%s1068_s1 + $0x28] sm:$0xff]  }
   0x7   :  { %709 = vmatpush3.bf16.msra.mxu0 %v803_v5  ;;  %v812_v14 = vld [vmem:[%s1068_s1 + $0xd8] sm:$0xff]   ;;  %v816_v18 = vld [vmem:[%s1068_s1 + $0xe0] sm:$0xff]   ;;  %v820_v22 = vld [vmem:[%s1068_s1 + $0xe8] sm:$0xff]  }
   0x8   :  { %710 = vmatprep.subr.bf16.mxu0 %v806_v8  ;;  %v813_v15 = vld [vmem:[%s1068_s1 + $0x98] sm:$0xff]   ;;  %v817_v19 = vld [vmem:[%s1068_s1 + $0xa0] sm:$0xff]   ;;  %v821_v23 = vld [vmem:[%s1068_s1 + $0xa8] sm:$0xff]  }
   0x9   :  { %731 = vmatpush3.bf16.msra.mxu1 %v805_v7  ;;  %v822_v24 = vld [vmem:[%s1068_s1 + $0x70] sm:$0xff]   ;;  %v826_v28 = vld [vmem:[%s1068_s1 + $0x78] sm:$0xff]   ;;  %v835_v36 = vld [vmem:[%s1069_s0 + $0xc] ss:$20 sps:$4 sm:$0xff]  }
   0xa   :  { %732 = vmatprep.subr.bf16.mxu1 %v808_v10  ;;  %v823_v25 = vld [vmem:[%s1068_s1 + $0x30] sm:$0xff]   ;;  %v827_v29 = vld [vmem:[%s1068_s1 + $0x38] sm:$0xff]   ;;  %v836_v37 = vld [vmem:[%s1068_s1 + $0x100] sm:$0xff]   ;;  %422 = vmatprep.mubr.bf16.mxu1 %v835_v36 }
   0xb   :  { %711 = vmatpush3.bf16.msra.mxu0 %v807_v9  ;;  %v824_v26 = vld [vmem:[%s1068_s1 + $0xf0] sm:$0xff]   ;;  %v828_v30 = vld [vmem:[%s1068_s1 + $0xf8] sm:$0xff]   ;;  %v837_v38 = vld [vmem:[%s1068_s1 + $0x108] sm:$0xff]  }
   0xc   :  { %712 = vmatprep.subr.bf16.mxu0 %v810_v12  ;;  %v825_v27 = vld [vmem:[%s1068_s1 + $0xb0] sm:$0xff]   ;;  %v831_v32 = vld [vmem:[%s1069_s0 + $0x4] ss:$20 sps:$4 sm:$0xff]   ;;  %v833_v35 = vld [vmem:[%s1069_s0 + $0x8] ss:$20 sps:$4 sm:$0xff]  }
   0xd   :  { %733 = vmatpush3.bf16.msra.mxu1 %v809_v11  ;;  %v829_v31 = vld [vmem:[%s1069_s0] ss:$20 sps:$4 sm:$0xff]   ;;  %v832_v34 = vld [vmem:[%s1068_s1 + $0xb8] sm:$0xff]   ;;  %381 = vmatprep.mubr.bf16.mxu0 %v831_v32  ;;  %v840_v41 = vld [vmem:[%s1069_s0 + $0x10] ss:$20 sps:$4 sm:$0xff]  }
   0xe   :  { %734 = vmatprep.subr.bf16.mxu1 %v812_v14  ;;  %v838_v39 = vld [vmem:[%s1068_s1 + $0x110] sm:$0xff]   ;;  %v839_v40 = vld [vmem:[%s1068_s1 + $0x118] sm:$0xff]   ;;  %v841_v42 = vld [vmem:[%s1070_s3] sm:$0xff]  }
   0xf   :  { %713 = vmatpush3.bf16.msra.mxu0 %v811_v13  ;;  %v842_v43 = vld [vmem:[%s1070_s3 + $0x8] sm:$0xff]   ;;  %v843_v44 = vld [vmem:[%s1070_s3 + $0x10] sm:$0xff]   ;;  %v844_v45 = vld [vmem:[%s1070_s3 + $0x18] sm:$0xff]  }
  0x10   :  { %714 = vmatprep.subr.bf16.mxu0 %v814_v16  ;;  %v845_v46 = vld [vmem:[%s1070_s3 + $0x20] sm:$0xff]   ;;  %v846_v47 = vld [vmem:[%s1070_s3 + $0x28] sm:$0xff]   ;;  %v847_v48 = vld [vmem:[%s1070_s3 + $0x30] sm:$0xff]  }
  0x11   :  { %735 = vmatpush3.bf16.msra.mxu1 %v813_v15  ;;  %v848_v49 = vld [vmem:[%s1070_s3 + $0x38] sm:$0xff]   ;;  %v652_v51 = vld [vmem:[%s1071_s2] ss:$0 sm:$0xff]  ;;  %v695_v10 = vld [vmem:[%s1071_s2 + $0x1] ss:$0 sm:$0xff] }
  0x12   :  { %736 = vmatprep.subr.bf16.mxu1 %v816_v18  ;;  %v696_v15 = vld [vmem:[%s1071_s2 + $0x2] ss:$0 sm:$0xff] }
  0x13   :  { %715 = vmatpush3.bf16.msra.mxu0 %v815_v17 }
  0x14   :  { %716 = vmatprep.subr.bf16.mxu0 %v818_v20  ;;  %v603_v20 = vlaneseq }
  0x15   :  { %737 = vmatpush3.bf16.msra.mxu1 %v817_v19 }
  0x16   :  { %738 = vmatprep.subr.bf16.mxu1 %v820_v22  ;;  %v697_v22 = vld [vmem:[%s1072_s4] ss:$0 sm:$0xff] }
  0x17   :  { %717 = vmatpush3.bf16.msra.mxu0 %v819_v21  ;;  %v604_v21 = vand.u32 127, %v603_v20 }
  0x18   :  { %718 = vmatprep.subr.bf16.mxu0 %v822_v24 }
  0x19   :  { %739 = vmatpush3.bf16.msra.mxu1 %v821_v23  ;;  %vm617_vm2 = vcmp.ge.s32.totalorder %v604_v21, 1  ;;  %vm643_vm4 = vcmp.eq.s32.totalorder %v604_v21, 0 }
  0x1a   :  { %740 = vmatprep.subr.bf16.mxu1 %v824_v26 }
  0x1b   :  { %719 = vmatpush3.bf16.msra.mxu0 %v823_v25 }
  0x1c   :  { %720 = vmatprep.subr.bf16.mxu0 %v826_v28 }
  0x1d   :  { %741 = vmatpush3.bf16.msra.mxu1 %v825_v27 }
  0x1e   :  { %742 = vmatprep.subr.bf16.mxu1 %v828_v30 }
  0x1f   :  { %721 = vmatpush3.bf16.msra.mxu0 %v827_v29 }
  0x20   :  { %764 = vmatprep.subr.bf16.mxu0 %v865_v33 }
  0x21   :  { %743 = vmatpush3.bf16.msra.mxu1 %v832_v34 }
  0x22   :  { %382 = vmatmul.mubr.bf16.vlgmr.msra.gmra.mrb[0].mxu0 %v829_v31  ;;  %776 = vmatprep.subr.bf16.mxu1 %v865_v33 }
  0x23   :  { %772 = vmatprep.mubr.msk.bf16.mxu0 %vm866_vm0, %v865_v33  ;;  %765 = vmatpush3.bf16.msra.mxu0 %v836_v37 }
  0x24   :  { %423 = vmatmul.mubr.bf16.vlgmr.msra.gmra.mrb[0].mxu1 %v833_v35  ;;  %766 = vmatprep.subr.bf16.mxu0 %v865_v33 }
  0x25   :  { %792 = vmatprep.mubr.msk.bf16.mxu1 %vm866_vm0, %v865_v33  ;;  %777 = vmatpush3.bf16.msra.mxu1 %v841_v42 }
  0x26   :  { %778 = vmatprep.subr.bf16.mxu1 %v865_v33 }
  0x27   :  { %767 = vmatpush3.bf16.msra.mxu0 %v837_v38 }
  0x28   :  { %768 = vmatprep.subr.bf16.mxu0 %v865_v33 }
  0x29   :  { %779 = vmatpush3.bf16.msra.mxu1 %v842_v43 }
  0x2a   :  { %780 = vmatprep.subr.bf16.mxu1 %v865_v33 }
  0x2b   :  { %769 = vmatpush3.bf16.msra.mxu0 %v838_v39 }
  0x2c   :  { %770 = vmatprep.subr.bf16.mxu0 %v865_v33 }
  0x2d   :  { %781 = vmatpush3.bf16.msra.mxu1 %v843_v44 }
  0x2e   :  { %782 = vmatprep.subr.bf16.mxu1 %v865_v33 }
  0x2f   :  { %771 = vmatpush3.bf16.msra.mxu0 %v839_v40 }
  0x31   :  { %783 = vmatpush3.bf16.msra.mxu1 %v844_v45 }
  0x32   :  { %773 = vmatmul.mubr.msk.bf16.vlgmr.msra.gmra.mrb[4].mxu0 %vm345_vm1, %v840_v41  ;;  %784 = vmatprep.subr.bf16.mxu1 %v865_v33 }
  0x35   :  { %785 = vmatpush3.bf16.msra.mxu1 %v845_v46 }
  0x36   :  { %786 = vmatprep.subr.bf16.mxu1 %v865_v33 }
  0x39   :  { %787 = vmatpush3.bf16.msra.mxu1 %v846_v47 }
  0x3a   :  { %788 = vmatprep.subr.bf16.mxu1 %v865_v33 }
  0x3d   :  { %789 = vmatpush3.bf16.msra.mxu1 %v847_v48 }
  0x3e   :  { %790 = vmatprep.subr.bf16.mxu1 %v865_v33 }
  0x41   :  { %791 = vmatpush3.bf16.msra.mxu1 %v848_v49 }
  0xf5   :  { %v722_v50 = vpop.f32.mrb[0].mxu0 }
  0xf6   :  { %v723_v52 = vpop.f32.mrb[1].mxu0 }
  0xf7   :  { %v724_v53 = vadd.f32 %v723_v52, %v722_v50  ;;  %v725_v54 = vpop.f32.mrb[2].mxu0  ;;  %v744_v55 = vpop.f32.mrb[0].mxu1 }
  0xf8   :  { %v726_v56 = vpop.f32.mrb[3].mxu0  ;;  %v745_v59 = vpop.f32.mrb[1].mxu1 }
  0xf9   :  { %v384_v57 = vadd.f32 %v724_v53, %v652_v51  ;;  %v727_v58 = vadd.f32 %v726_v56, %v725_v54  ;;  %v746_v60 = vadd.f32 %v745_v59, %v744_v55  ;;  %v747_v61 = vpop.f32.mrb[2].mxu1 }
  0xfa   :  { %v748_v63 = vpop.f32.mrb[3].mxu1 }
  0xfb   :  { %v387_v62 = vadd.f32 %v727_v58, %v652_v51  ;;  %v749_v0 = vadd.f32 %v748_v63, %v747_v61  ;;  %v425_v1 = vadd.f32 %v746_v60, %v384_v57 }
  0xfd   :  { %v428_v2 = vadd.f32 %v749_v0, %v387_v62 }
 0x105   :  { %v465_v3 = vpop.f32.mrb[4].mxu0 }
 0x106   :  { %v466_v4 = vadd.f32 %v465_v3, %v425_v1  ;;  %v774_v5 = vpop.f32.mrb[5].mxu0 }
 0x107   :  { %v468_v6 = vpop.f32.mrb[6].mxu0 }
 0x108   :  { %v472_v7 = vmul.f32 0.2, %v466_v4  ;;  %v469_v8 = vadd.f32 %v468_v6, %v428_v2  ;;  %v775_v9 = vpop.f32.mrb[7].mxu0 }
 0x10a   :  { %v474_v11 = vmax.f32 %v466_v4, %v472_v7  ;;  %v473_v12 = vmul.f32 0.2, %v469_v8 }
 0x10c   :  { %v481_v13 = vmul.f32 %v695_v10, %v474_v11  ;;  %v475_v14 = vmax.f32 %v469_v8, %v473_v12 }
 0x10e   :  { %v482_v16 = vmul.f32 %v695_v10, %v475_v14  ;;  %v488_v17 = vadd.f32 %v696_v15, %v481_v13 }
 0x110   :  { %v489_v18 = vadd.f32 %v696_v15, %v482_v16 }
 0x112   :  { %v490_v19 = vpack.c.bf16 %v489_v18, %v488_v17 }
 0x114   :  { %793 = vmatmul.mubr.bf16.vlgmr.msra.gmra.mrb[4].mxu1 %v490_v19 }
 0x1e7   :  { %v596_v23 = vpop.f32.mrb[4].mxu1 }
 0x1e8   :  { %v597_v24 = vadd.f32 %v697_v22, %v596_v23  ;;  %v794_v25 = vpop.f32.mrb[5].mxu1 }
 0x1e9   :  { %v599_v26 = vpop.f32.mrb[6].mxu1 }
 0x1ea   :  { %v600_v27 = vadd.f32 %v697_v22, %v599_v26  ;;  %v795_v28 = vpop.f32.mrb[7].mxu1  ;;  %v618_v29 = vsel %vm617_vm2, %v597_v24, -1e+30  ;;  %v605_v43 = vsub.f32 0.0, %v597_v24 }
 0x1eb   :  { %v621_v30 = vsel %vm620_vm3, %v618_v29, -inf }
 0x1ec   :  { %622 = vmax.xlane.f32.xlu0 %v621_v30  ;;  %v619_v31 = vsel %vm617_vm2, %v600_v27, -1e+30  ;;  %v607_v44 = vmul.f32 1.442695, %v605_v43  ;;  %v606_v45 = vsub.f32 0.0, %v600_v27 }
 0x1ed   :  { %v624_v32 = vsel %vm620_vm3, %v619_v31, -inf }
 0x1ee   :  { %v609_v46 = vmul.f32 1.442695, %v606_v45 }
 0x1f0   :  { %625 = vmax.xlane.f32.xlu0 %v624_v32 }
 0x279   :  { %v623_v33 = vpop.xlane.xlu0 %622 }
 0x27a   :  { %v627_v34 = vsub.f32 %v618_v29, %v623_v33 }
 0x27c   :  { %v629_v35 = vmul.f32 1.442695, %v627_v34 }
 0x27d   :  { %v626_v36 = vpop.xlane.xlu0 %625 }
 0x27e   :  { %849 = vpow2.f32 %v629_v35  ;;  %v628_v37 = vsub.f32 %v619_v31, %v626_v36 }
 0x280   :  { %v631_v38 = vmul.f32 1.442695, %v628_v37 }
 0x282   :  { %851 = vpow2.f32 %v631_v38 }
 0x283   :  { %853 = vpow2.f32 %v607_v44 }
 0x284   :  { %855 = vpow2.f32 %v609_v46 }
 0x288   :  { %v850_v39 = vpop.eup %849 }
 0x289   :  { %v633_v40 = vsel %vm620_vm3, %v850_v39, 0.0 }
 0x28a   :  { %634 = vadd.xlane.f32.xlu1 %v633_v40 }
 0x28c   :  { %v852_v41 = vpop.eup %851 }
 0x28d   :  { %v636_v42 = vsel %vm620_vm3, %v852_v41, 0.0  ;;  %v854_v47 = vpop.eup %853 }
 0x28e   :  { %637 = vadd.xlane.f32.xlu1 %v636_v42  ;;  %v611_v48 = vadd.f32 1.0, %v854_v47  ;;  %v856_v49 = vpop.eup %855 }
 0x28f   :  { %v612_v51 = vadd.f32 1.0, %v856_v49 }
 0x317   :  { %v635_v50 = vpop.xlane.xlu1 %634 }
 0x318   :  { %857 = vrcp.f32 %v635_v50 }
 0x319   :  { %859 = vrcp.f32 %v611_v48 }
 0x31b   :  { %v638_v52 = vpop.xlane.xlu1 %637 }
 0x31c   :  { %861 = vrcp.f32 %v638_v52 }
 0x31d   :  { %863 = vrcp.f32 %v612_v51 }
 0x322   :  { %v858_v53 = vpop.eup %857 }
 0x323   :  { %v640_v54 = vmul.f32 %v858_v53, %v850_v39  ;;  %v860_v55 = vpop.eup %859 }
 0x325   :  { %v644_v56 = vsel %vm643_vm4, %v860_v55, %v640_v54 }
 0x326   :  { %v862_v57 = vpop.eup %861  ;;  %646 = vst.msk [vmem:[%s1073_s5] sm:$0xff] %vm620_vm3, %v644_v56 }
 0x327   :  { %v642_v58 = vmul.f32 %v862_v57, %v852_v41  ;;  %v864_v59 = vpop.eup %863 }
 0x329   :  { %v645_v60 = vsel %vm643_vm4, %v864_v59, %v642_v58 }
 0x32a   :  { %647 = vst.msk [vmem:[%s1073_s5 + $0x8] sm:$0xff] %vm620_vm3, %v645_v60 }

</bundles_post_ra>
